<compile_context>
chip_gen: v7x
topology: tpu7x:2x2x1
jax: 0.10.0
libtpu: 0.0.40
codegen_flags: <defaults>
</compile_context>

<pallas_src>
import numpy as np
import jax
import jax.numpy as jnp
from jax import lax
from jax.experimental import pallas as pl
from jax.experimental.pallas import tpu as pltpu


MATMUL_DTYPE = jnp.bfloat16        # MXU operand dtype (accumulation stays f32)
INTERMEDIATE_DTYPE = jnp.bfloat16  # inter-kernel activation storage dtype


def _compiler_params(dims, block_bytes):
    """dimension_semantics + scoped-VMEM bump, capped well under v7x's 64 MiB."""
    kwargs = dict(dimension_semantics=dims)
    need = 2 * int(block_bytes) + (4 << 20)          # x2: double buffering + headroom
    if need > (16 << 20):                            # smallest default scoped VMEM (v5e)
        kwargs["vmem_limit_bytes"] = int(min(need, 40 << 20))
    return pltpu.CompilerParams(**kwargs)


# ----------------------------------------------------------------------------
# Kernel 1: 1x1 conv (pointwise) + folded BN + optional ReLU6 as a tiled matmul.
#           BN scale is pre-folded into the bf16 weight; epilogue = bias (+clip).
# ----------------------------------------------------------------------------
def _make_pointwise_kernel(relu6):
    def kernel(x_ref, w_ref, b_ref, o_ref):
        xb = x_ref[...].astype(MATMUL_DTYPE)
        y = jnp.dot(xb, w_ref[...], preferred_element_type=jnp.float32)
        y = y + b_ref[...]
        if relu6:
            y = jnp.clip(y, 0.0, 6.0)
        o_ref[...] = y.astype(o_ref.dtype)
    return kernel


def _pick_row_tile(P, max_tile=1024):
    if P <= max_tile:
        return P                          # single full-extent block (always legal)
    for t in range(max_tile, 7, -8):      # largest sublane-aligned exact divisor
        if P % t == 0:
            return t
    return max_tile                       # partial last block; OOB rows are masked


def pointwise_conv_bn(x2d, w_eff, bias, relu6, out_dtype=INTERMEDIATE_DTYPE):
    P, Cin = x2d.shape
    Cout = w_eff.shape[1]
    tile = _pick_row_tile(P)
    n_tiles = pl.cdiv(P, tile)

    est = tile * (Cin * x2d.dtype.itemsize
                  + Cout * np.dtype(out_dtype).itemsize
                  + Cout * 4) + Cin * Cout * 2
    return pl.pallas_call(
        _make_pointwise_kernel(relu6),
        out_shape=jax.ShapeDtypeStruct((P, Cout), out_dtype),
        grid=(n_tiles,),
        in_specs=[
            pl.BlockSpec((tile, Cin), lambda i: (i, 0)),
            pl.BlockSpec((Cin, Cout), lambda i: (0, 0)),
            pl.BlockSpec((1, Cout), lambda i: (0, 0)),
        ],
        out_specs=pl.BlockSpec((tile, Cout), lambda i: (i, 0)),
        compiler_params=_compiler_params(("parallel",), est),
    )(x2d, w_eff, bias)


# ----------------------------------------------------------------------------
# Kernel 2: depthwise 3x3 conv + folded BN + ReLU6.
#           Halo pad is built in VMEM; stride-2 uses a parity decomposition.
# ----------------------------------------------------------------------------
def _make_depthwise_kernel(H, W, Ho, Wo, K, stride, pad, Ct):
    Hp, Wp = H + 2 * pad, W + 2 * pad

    def kernel(x_ref, w_ref, s_ref, b_ref, o_ref, xp_ref):
        # Build the halo-padded tile in VMEM (no HBM pad pass).
        xp_ref[...] = jnp.zeros((Hp, Wp, Ct), jnp.float32)
        xp_ref[pad:pad + H, pad:pad + W, :] = x_ref[0].astype(jnp.float32)
        x = xp_ref[...]
        w = w_ref[...].astype(jnp.float32)           # (K, K, Ct)

        acc = jnp.zeros((Ho, Wo, Ct), jnp.float32)
        if stride == 1:
            for i in range(K):
                for j in range(K):
                    acc = acc + x[i:i + Ho, j:j + Wo, :] * w[i, j]
        else:
            # Strided sublane (W) gather done once per W-parity (stride x), not per tap.
            xpar = []
            for dj in range(stride):
                wlen = (Wp - dj + stride - 1) // stride
                lim = dj + (wlen - 1) * stride + 1
                xpar.append(lax.slice(x, (0, dj, 0), (Hp, lim, Ct), (1, stride, 1)))
            for i in range(K):
                for j in range(K):
                    src = xpar[j % stride]
                    jj = j // stride
                    tap = lax.slice(src, (i, jj, 0),
                                    (i + stride * (Ho - 1) + 1, jj + Wo, Ct),
                                    (stride, 1, 1))
                    acc = acc + tap * w[i, j]

        y = acc * s_ref[0] + b_ref[0]
        o_ref[0] = jnp.clip(y, 0.0, 6.0).astype(o_ref.dtype)

    return kernel


def depthwise_conv_bn_relu6(x, w, scale, bias, Ho, Wo, stride,
                            out_dtype=INTERMEDIATE_DTYPE):
    N, H, W, C = x.shape
    K = w.shape[0]
    pad = (K - 1) // 2
    Ct = 128 if (C % 128 == 0) else C
    n_ct = C // Ct
    Hp, Wp = H + 2 * pad, W + 2 * pad

    est = (H * W * x.dtype.itemsize + 2 * Hp * Wp * 4
           + Ho * Wo * np.dtype(out_dtype).itemsize + Ho * Wo * 4) * Ct + K * K * Ct * 4
    return pl.pallas_call(
        _make_depthwise_kernel(H, W, Ho, Wo, K, stride, pad, Ct),
        out_shape=jax.ShapeDtypeStruct((N, Ho, Wo, C), out_dtype),
        grid=(N, n_ct),
        in_specs=[
            pl.BlockSpec((1, H, W, Ct), lambda n, c: (n, 0, 0, c)),
            pl.BlockSpec((K, K, Ct), lambda n, c: (0, 0, c)),
            pl.BlockSpec((1, Ct), lambda n, c: (0, c)),
            pl.BlockSpec((1, Ct), lambda n, c: (0, c)),
        ],
        out_specs=pl.BlockSpec((1, Ho, Wo, Ct), lambda n, c: (n, 0, 0, c)),
        scratch_shapes=[pltpu.VMEM((Hp, Wp, Ct), jnp.float32)],
        compiler_params=_compiler_params(("parallel", "parallel"), est),
    )(x, w, scale, bias)


# ----------------------------------------------------------------------------
# Kernel 3: fully fused CBAM (ChannelGate + ChannelPool + SpatialGate) + residual.
#   y is read from HBM exactly once; the gated activation never leaves VMEM.
#   7x7 conv weights / folded BN bias are read as SMEM scalars.
# ----------------------------------------------------------------------------
def _make_cbam_kernel(H, W, K, use_res):
    pad = (K - 1) // 2
    Hp, Wp = H + 2 * pad, W + 2 * pad

    def body(y_ref, w1_ref, b1_ref, w2_ref, b2_ref, wsp_ref, bsp_ref,
             r_ref, o_ref, pmax_ref, pmean_ref):
        y = y_ref[0].astype(jnp.float32)                          # (H, W, C)
        C = y.shape[-1]

        # --- ChannelGate: direct spatial reductions (no (H*W, C) reshape) ---
        avg = jnp.mean(jnp.mean(y, axis=0), axis=0, keepdims=True)   # (1, C)
        mx = jnp.max(jnp.max(y, axis=0), axis=0, keepdims=True)      # (1, C)
        pooled = jnp.concatenate([avg, mx], axis=0)                  # (2, C) batched MLP
        h = jnp.dot(pooled, w1_ref[...], preferred_element_type=jnp.float32) + b1_ref[...]
        h = jnp.maximum(h, 0.0)
        att = jnp.dot(h, w2_ref[...], preferred_element_type=jnp.float32) + b2_ref[...]
        cgate = jax.nn.sigmoid(att[0:1] + att[1:2])                  # (1, C)
        ys = y * cgate.reshape(1, 1, C)                              # gated y (f32, VMEM only)

        # --- ChannelPool + in-VMEM halo pad for the 7x7 spatial conv ---
        pmax_ref[...] = jnp.zeros((Hp, Wp), jnp.float32)
        pmean_ref[...] = jnp.zeros((Hp, Wp), jnp.float32)
        pmax_ref[pad:pad + H, pad:pad + W] = jnp.max(ys, axis=-1)
        pmean_ref[pad:pad + H, pad:pad + W] = jnp.mean(ys, axis=-1)
        planes = (pmax_ref[...], pmean_ref[...])

        # --- 7x7 conv: weights as SMEM scalars (no per-tap vreg broadcasts) ---
        acc = jnp.zeros((H, W), jnp.float32)
        for c in range(2):
            pc = planes[c]
            for i in range(K):
                for j in range(K):
                    acc = acc + pc[i:i + H, j:j + W] * wsp_ref[c * K * K + i * K + j]
        sgate = jax.nn.sigmoid(acc + bsp_ref[0])                     # (H, W)

        out = ys * sgate[:, :, None]
        if use_res:
            out = out + r_ref[0].astype(jnp.float32)
        o_ref[0] = out.astype(o_ref.dtype)

    if use_res:
        def kernel(y_ref, w1_ref, b1_ref, w2_ref, b2_ref, wsp_ref, bsp_ref,
                   r_ref, o_ref, pmax_ref, pmean_ref):
            body(y_ref, w1_ref, b1_ref, w2_ref, b2_ref, wsp_ref, bsp_ref,
                 r_ref, o_ref, pmax_ref, pmean_ref)
    else:
        def kernel(y_ref, w1_ref, b1_ref, w2_ref, b2_ref, wsp_ref, bsp_ref,
                   o_ref, pmax_ref, pmean_ref):
            body(y_ref, w1_ref, b1_ref, w2_ref, b2_ref, wsp_ref, bsp_ref,
                 None, o_ref, pmax_ref, pmean_ref)
    return kernel


def cbam_fused(y, w1, b1, w2, b2, wsp_flat, bsp, res=None):
    N, H, W, C = y.shape
    Cr = w1.shape[1]
    K = 7
    pad = (K - 1) // 2
    Hp, Wp = H + 2 * pad, W + 2 * pad
    use_res = res is not None

    in_specs = [
        pl.BlockSpec((1, H, W, C), lambda n: (n, 0, 0, 0)),
        pl.BlockSpec((C, Cr), lambda n: (0, 0)),
        pl.BlockSpec((1, Cr), lambda n: (0, 0)),
        pl.BlockSpec((Cr, C), lambda n: (0, 0)),
        pl.BlockSpec((1, C), lambda n: (0, 0)),
        pl.BlockSpec(memory_space=pltpu.MemorySpace.SMEM),   # (2*7*7,) conv weights
        pl.BlockSpec(memory_space=pltpu.MemorySpace.SMEM),   # (1,) folded BN bias
    ]
    args = [y, w1, b1, w2, b2, wsp_flat, bsp]
    if use_res:
        in_specs.append(pl.BlockSpec((1, H, W, C), lambda n: (n, 0, 0, 0)))
        args.append(res)

    est = H * W * C * (y.dtype.itemsize + 4 + 4 + (4 if use_res else 0)) \
        + 2 * Hp * Wp * 4 + (C * Cr + Cr * C + Cr + C) * 4
    return pl.pallas_call(
        _make_cbam_kernel(H, W, K, use_res),
        out_shape=jax.ShapeDtypeStruct((N, H, W, C), jnp.float32),
        grid=(N,),
        in_specs=in_specs,
        out_specs=pl.BlockSpec((1, H, W, C), lambda n: (n, 0, 0, 0)),
        scratch_shapes=[pltpu.VMEM((Hp, Wp), jnp.float32),
                        pltpu.VMEM((Hp, Wp), jnp.float32)],
        compiler_params=_compiler_params(("parallel",), est),
    )(*args)


# ----------------------------------------------------------------------------
# Full InvertedResidual forward (Pallas kernels + thin JAX glue)
# ----------------------------------------------------------------------------
def inverted_residual_forward(x_nchw, p, stride, expand_ratio, use_res):
    x = jnp.transpose(x_nchw, (0, 2, 3, 1)).astype(jnp.float32)   # NCHW -> NHWC
    N, H, W, Cin = x.shape

    if expand_ratio != 1:
        hid = p["w_exp"].shape[1]
        w_exp_eff = (p["w_exp"] * p["s_exp"]).astype(MATMUL_DTYPE)     # BN scale folded
        h2d = pointwise_conv_bn(x.reshape(N * H * W, Cin), w_exp_eff, p["b_exp"],
                                relu6=True)
        h = h2d.reshape(N, H, W, hid)
    else:
        hid = Cin
        h = x.astype(INTERMEDIATE_DTYPE)

    # depthwise 3x3, padding=1; halo pad & strided output handled in-kernel
    Ho = (H + 2 - 3) // stride + 1
    Wo = (W + 2 - 3) // stride + 1
    hdw = depthwise_conv_bn_relu6(h, p["w_dw"], p["s_dw"], p["b_dw"], Ho, Wo, stride)

    # linear projection 1x1 + BN (no activation), BN scale folded into weights
    oup = p["w_proj"].shape[1]
    w_proj_eff = (p["w_proj"] * p["s_proj"]).astype(MATMUL_DTYPE)
    y2d = pointwise_conv_bn(hdw.reshape(N * Ho * Wo, hid), w_proj_eff, p["b_proj"],
                            relu6=False)
    y = y2d.reshape(N, Ho, Wo, oup)

    # fully fused CBAM (channel gate + pool + 7x7 spatial gate) + residual add
    out = cbam_fused(y, p["w1_cg"], p["b1_cg"], p["w2_cg"], p["b2_cg"],
                     p["w_sp_eff"].reshape(-1), p["b_sp_eff"].reshape(-1),
                     res=x if use_res else None)

    return jnp.transpose(out, (0, 3, 1, 2))                       # NHWC -> NCHW


# ----------------------------------------------------------------------------
# Pure-JAX reference with the same precision policy (for correctness check)
# ----------------------------------------------------------------------------
def ref_forward(x_nchw, p, stride, expand_ratio, use_res):
    f32, cdt, idt = jnp.float32, MATMUL_DTYPE, INTERMEDIATE_DTYPE
    hiprec = lax.Precision.HIGHEST

    x = jnp.transpose(x_nchw, (0, 2, 3, 1)).astype(f32)
    if expand_ratio != 1:
        w_eff = (p["w_exp"] * p["s_exp"]).astype(cdt)
        h = jnp.einsum("nhwc,cd->nhwd", x.astype(cdt), w_eff,
                       preferred_element_type=f32)
        h = jnp.clip(h + p["b_exp"][0], 0.0, 6.0).astype(idt)
    else:
        h = x.astype(idt)
    h = h.astype(f32)
    hid = h.shape[-1]

    dn = lax.conv_dimension_numbers(h.shape, (3, 3, 1, hid), ("NHWC", "HWIO", "NHWC"))
    hdw = lax.conv_general_dilated(h, p["w_dw"].reshape(3, 3, 1, hid),
                                   (stride, stride), ((1, 1), (1, 1)),
                                   dimension_numbers=dn, feature_group_count=hid,
                                   precision=hiprec)
    hdw = jnp.clip(hdw * p["s_dw"][0] + p["b_dw"][0], 0.0, 6.0).astype(idt).astype(f32)

    w_proj_eff = (p["w_proj"] * p["s_proj"]).astype(cdt)
    y = jnp.einsum("nhwc,cd->nhwd", hdw.astype(cdt), w_proj_eff,
                   preferred_element_type=f32)
    y = (y + p["b_proj"][0]).astype(idt).astype(f32)

    avg = y.mean(axis=(1, 2))
    mx = y.max(axis=(1, 2))

    def mlp(v):
        return jnp.maximum(v @ p["w1_cg"] + p["b1_cg"][0], 0.0) @ p["w2_cg"] + p["b2_cg"][0]

    sc = jax.nn.sigmoid(mlp(avg) + mlp(mx))
    ys = y * sc[:, None, None, :]

    pool = jnp.stack([ys.max(axis=-1), ys.mean(axis=-1)], axis=-1)   # (N,Ho,Wo,2)
    dn2 = lax.conv_dimension_numbers(pool.shape, (7, 7, 2, 1), ("NHWC", "HWIO", "NHWC"))
    w_hwio = jnp.transpose(p["w_sp_eff"], (1, 2, 0)).reshape(7, 7, 2, 1)
    g = lax.conv_general_dilated(pool, w_hwio, (1, 1), ((3, 3), (3, 3)),
                                 dimension_numbers=dn2, precision=hiprec)
    g = jax.nn.sigmoid(g + p["b_sp_eff"][0, 0])
    out = ys * g
    if use_res:
        out = out + x
    return jnp.transpose(out, (0, 3, 1, 2))


# ----------------------------------------------------------------------------
# Deterministic parameter init (eval-mode BN folded into scale/bias)
# ----------------------------------------------------------------------------
def init_params(key, inp, oup, expand_ratio, reduction=8):
    hid = int(round(inp * expand_ratio))
    keys = iter(jax.random.split(key, 40))
    nk = lambda: next(keys)

    def rnd(shape, scale=0.1):
        return scale * jax.random.normal(nk(), shape, jnp.float32)

    def bn_fold(c):
        gamma = 1.0 + rnd((c,))
        beta = rnd((c,))
        mean = rnd((c,))
        var = 1.0 + 0.05 * jnp.abs(jax.random.normal(nk(), (c,), jnp.float32))
        s = gamma / jnp.sqrt(var + 1e-5)
        return s.reshape(1, c), (beta - mean * s).reshape(1, c)

    p = {}
    if expand_ratio != 1:
        p["w_exp"] = rnd((inp, hid), 0.2)
        p["s_exp"], p["b_exp"] = bn_fold(hid)
    p["w_dw"] = rnd((3, 3, hid), 0.2)
    p["s_dw"], p["b_dw"] = bn_fold(hid)
    p["w_proj"] = rnd((hid, oup), 0.2)
    p["s_proj"], p["b_proj"] = bn_fold(oup)

    cr = max(oup // reduction, 1)
    p["w1_cg"] = rnd((oup, cr), 0.3)
    p["b1_cg"] = rnd((1, cr))
    p["w2_cg"] = rnd((cr, oup), 0.3)
    p["b2_cg"] = rnd((1, oup))

    # SpatialGate: 7x7 conv (2->1, no bias) with BN(1) folded in; stored (2,7,7)
    # channel-major ([max, mean]) so it matches the kernel's pool plane order.
    w_sp = rnd((2, 7, 7), 0.2)
    gamma = 1.0 + 0.1 * jax.random.normal(nk(), (), jnp.float32)
    beta = 0.1 * jax.random.normal(nk(), (), jnp.float32)
    mean = 0.1 * jax.random.normal(nk(), (), jnp.float32)
    var = 1.0 + 0.05 * jnp.abs(jax.random.normal(nk(), (), jnp.float32))
    s = gamma / jnp.sqrt(var + 1e-5)
    p["w_sp_eff"] = w_sp * s
    p["b_sp_eff"] = jnp.reshape(beta - mean * s, (1, 1))
    return p


if __name__ == "__main__":
    key = jax.random.PRNGKey(0)
    configs = [
        # (N, inp, oup, H, W, stride, expand_ratio)
        (2, 16, 16, 16, 16, 1, 4),   # residual branch, stride 1, expansion
        (2, 16, 24, 16, 16, 2, 6),   # no residual, stride 2 (parity DW path)
        (2, 16, 16, 16, 16, 1, 1),   # no expansion (first MobileNetV2 block style)
    ]
    all_ok = True
    for idx, (N, inp, oup, H, W, stride, er) in enumerate(configs):
        use_res = (stride == 1 and inp == oup)
        params = init_params(jax.random.fold_in(key, idx), inp, oup, er, reduction=8)
        x = jax.random.normal(jax.random.fold_in(key, 100 + idx),
                              (N, inp, H, W), jnp.float32)

        out = jax.block_until_ready(
            inverted_residual_forward(x, params, stride, er, use_res))
        Ho = (H - 1) // stride + 1
        Wo = (W - 1) // stride + 1
        assert out.shape == (N, oup, Ho, Wo), out.shape

        ref = ref_forward(x, params, stride, er, use_res)
        err = float(jnp.max(jnp.abs(out - ref)))
        tol = 1e-3 if INTERMEDIATE_DTYPE == jnp.float32 else 6e-2
        if not (err < tol):
            all_ok = False
            print(f"MISMATCH config={idx} max_abs_err={err:.4g}")

    if all_ok:
        print("KERNEL_OK")
</pallas_src>

<mosaic_0001>
module attributes {stable_mosaic.version = 11 : i64} {
  func.func @kernel(%arg0: i32, %arg1: memref<512x16xf32, #tpu.memory_space<vmem>>, %arg2: memref<16x64xbf16, #tpu.memory_space<vmem>>, %arg3: memref<1x64xf32, #tpu.memory_space<vmem>>, %arg4: memref<512x64xbf16, #tpu.memory_space<vmem>>) attributes {dimension_semantics = [#tpu.dimension_semantics<parallel>], iteration_bounds = array<i64: 1>, scalar_prefetch = 0 : i64, scratch_operands = 0 : i64, tpu.core_type = #tpu.core_type<tc>, window_params = [{transform_indices = @transform_0, window_bounds = array<i64: 512, 16>}, {pipeline_mode = #tpu.pipeline_mode<synchronous>, transform_indices = @transform_1, window_bounds = array<i64: 16, 64>}, {pipeline_mode = #tpu.pipeline_mode<synchronous>, transform_indices = @transform_2, window_bounds = array<i64: 1, 64>}, {transform_indices = @transform_3, window_bounds = array<i64: 512, 64>}]} {
    %c0 = arith.constant 0 : index
    %c0_0 = arith.constant 0 : index
    %0 = vector.load %arg1[%c0, %c0_0] : memref<512x16xf32, #tpu.memory_space<vmem>>, vector<512x16xf32>
    %1 = arith.truncf %0 : vector<512x16xf32> to vector<512x16xbf16>
    %c0_1 = arith.constant 0 : index
    %c0_2 = arith.constant 0 : index
    %2 = vector.load %arg2[%c0_1, %c0_2] : memref<16x64xbf16, #tpu.memory_space<vmem>>, vector<16x64xbf16>
    %cst = arith.constant dense<0.000000e+00> : vector<512x64xf32>
    %3 = tpu.matmul %1, %2, %cst {dimension_numbers = #tpu.dot_dimension_numbers<[1], [0], [0], [1], [0, 0, 1, 1], [], []>} : vector<512x16xbf16>, vector<16x64xbf16>, vector<512x64xf32> -> vector<512x64xf32>
    %c0_3 = arith.constant 0 : index
    %c0_4 = arith.constant 0 : index
    %4 = vector.load %arg3[%c0_3, %c0_4] : memref<1x64xf32, #tpu.memory_space<vmem>>, vector<1x64xf32>
    %5 = vector.broadcast %4 : vector<1x64xf32> to vector<512x64xf32>
    %6 = arith.addf %3, %5 : vector<512x64xf32>
    %cst_5 = arith.constant 0.000000e+00 : f32
    %cst_6 = arith.constant 6.000000e+00 : f32
    %7 = vector.broadcast %cst_5 : f32 to vector<512x64xf32>
    %8 = arith.maximumf %7, %6 : vector<512x64xf32>
    %9 = vector.broadcast %cst_6 : f32 to vector<512x64xf32>
    %10 = arith.minimumf %9, %8 : vector<512x64xf32>
    %11 = arith.truncf %10 : vector<512x64xf32> to vector<512x64xbf16>
    %c0_7 = arith.constant 0 : index
    %c0_8 = arith.constant 0 : index
    %12 = vector.load %arg4[%c0_7, %c0_8] : memref<512x64xbf16, #tpu.memory_space<vmem>>, vector<512x64xbf16>
    tpu.vector_store %arg4[%c0_7, %c0_8], %11 {strides = array<i32>} : memref<512x64xbf16, #tpu.memory_space<vmem>>, vector<512x64xbf16>,
    return
  }
  func.func @transform_0(%arg0: i32) -> (i32, i32) {
    %c0_i32 = arith.constant 0 : i32
    %c0_i32_0 = arith.constant 0 : i32
    return %arg0, %c0_i32 : i32, i32
  }
  func.func @transform_1(%arg0: i32) -> (i32, i32) {
    %c0_i32 = arith.constant 0 : i32
    %c0_i32_0 = arith.constant 0 : i32
    %c0_i32_1 = arith.constant 0 : i32
    return %c0_i32, %c0_i32_0 : i32, i32
  }
  func.func @transform_2(%arg0: i32) -> (i32, i32) {
    %c0_i32 = arith.constant 0 : i32
    %c0_i32_0 = arith.constant 0 : i32
    %c0_i32_1 = arith.constant 0 : i32
    return %c0_i32, %c0_i32_0 : i32, i32
  }
  func.func @transform_3(%arg0: i32) -> (i32, i32) {
    %c0_i32 = arith.constant 0 : i32
    %c0_i32_0 = arith.constant 0 : i32
    return %arg0, %c0_i32 : i32, i32
  }
}

</mosaic_0001>

<bundles_post_ra>
// kernel: tpu_custom_call.1
= control target key start
LH: loop header
LB: loop body
LE: loop exit
PB: predicated region body
PF: predicated region fallthrough
CT: control target
= control target key end

     0   :  { %vm126_vm0 = vcmask 130048   ;;  %vm896_vm1 = vcmask 519168   ;;  %s1801_s1 = inlined_call_operand.vmem [shape: bf16[16,64], index: 1, kind: input, shape index: {}]   ;;  %s1802_s0 = inlined_call_operand.vmem [shape: f32[512,16], index: 0, kind: input, shape index: {}]   ;;  %s1803_s2 = inlined_call_operand.vmem [shape: f32[1,64], index: 2, kind: input, shape index: {}]   ;;  %s1804_s3 = inlined_call_operand.vmem [shape: bf16[512,64], index: 3, kind: output, shape index: {}]  }
   0x1   :  { %v1228_v0 = vld [vmem:[%s1801_s1] sm:$0xff]   ;;  %v16_v2 = vld [vmem:[%s1802_s0 + $0x8] sm:$0xff]  ;;  %v17_v6 = vld [vmem:[%s1802_s0 + $0x10] sm:$0xff] }
   0x2   :  { %v15_v1 = vld [vmem:[%s1802_s0] sm:$0xff]  ;;  %1160 = vmatprep.subr.bf16.mxu0 %v1228_v0  ;;  %1226 = vmatprep.subr.bf16.mxu1 %v1228_v0  ;;  %v48_v5 = vld [vmem:[%s1802_s0 + $0x108] sm:$0xff]  ;;  %v18_v7 = vld [vmem:[%s1802_s0 + $0x18] sm:$0xff] }
   0x3   :  { %v47_v3 = vld [vmem:[%s1802_s0 + $0x100] sm:$0xff]  ;;  %v79_v4 = vpack.c.bf16 %v16_v2, %v15_v1  ;;  %1161 = vmatpush3.bf16.msra.mxu0 %v1228_v0  ;;  %1227 = vmatpush3.bf16.msra.mxu1 %v1228_v0  ;;  %v80_v9 = vpack.c.bf16 %v18_v7, %v17_v6  ;;  %v49_v10 = vld [vmem:[%s1802_s0 + $0x110] sm:$0xff]  ;;  %v50_v11 = vld [vmem:[%s1802_s0 + $0x118] sm:$0xff] }
   0x4   :  { %v95_v8 = vpack.c.bf16 %v48_v5, %v47_v3  ;;  %v19_v12 = vld [vmem:[%s1802_s0 + $0x20] sm:$0xff]  ;;  %v96_v13 = vpack.c.bf16 %v50_v11, %v49_v10  ;;  %v20_v14 = vld [vmem:[%s1802_s0 + $0x28] sm:$0xff]  ;;  %v21_v19 = vld [vmem:[%s1802_s0 + $0x30] sm:$0xff] }
   0x5   :  { %1162 = vmatprep.mubr.msk.bf16.mxu0 %vm126_vm0, %v79_v4  ;;  %v51_v15 = vld [vmem:[%s1802_s0 + $0x120] sm:$0xff]  ;;  %v52_v16 = vld [vmem:[%s1802_s0 + $0x128] sm:$0xff]  ;;  %v81_v17 = vpack.c.bf16 %v20_v14, %v19_v12  ;;  %v22_v20 = vld [vmem:[%s1802_s0 + $0x38] sm:$0xff] }
   0x6   :  { %1194 = vmatprep.mubr.msk.bf16.mxu1 %vm126_vm0, %v95_v8  ;;  %v97_v18 = vpack.c.bf16 %v52_v16, %v51_v15  ;;  %1163 = vmatmul.mubr.msk.bf16.vlgmr.msra.gmra.mrb[0].mxu0 %vm126_vm0, %v80_v9  ;;  %v53_v21 = vld [vmem:[%s1802_s0 + $0x130] sm:$0xff]  ;;  %v54_v22 = vld [vmem:[%s1802_s0 + $0x138] sm:$0xff]  ;;  %v23_v23 = vld [vmem:[%s1802_s0 + $0x40] sm:$0xff]  ;;  %v82_v27 = vpack.c.bf16 %v22_v20, %v21_v19 }
   0x7   :  { %1195 = vmatmul.mubr.msk.bf16.vlgmr.msra.gmra.mrb[0].mxu1 %vm126_vm0, %v96_v13  ;;  %1166 = vmatprep.mubr.msk.bf16.mxu0 %vm126_vm0, %v81_v17  ;;  %v24_v24 = vld [vmem:[%s1802_s0 + $0x48] sm:$0xff]  ;;  %v55_v25 = vld [vmem:[%s1802_s0 + $0x140] sm:$0xff]  ;;  %v98_v28 = vpack.c.bf16 %v54_v22, %v53_v21  ;;  %v25_v31 = vld [vmem:[%s1802_s0 + $0x50] sm:$0xff] }
   0x8   :  { %1198 = vmatprep.mubr.msk.bf16.mxu1 %vm126_vm0, %v97_v18  ;;  %v56_v26 = vld [vmem:[%s1802_s0 + $0x148] sm:$0xff]  ;;  %v83_v29 = vpack.c.bf16 %v24_v24, %v23_v23  ;;  %v26_v32 = vld [vmem:[%s1802_s0 + $0x58] sm:$0xff]  ;;  %v57_v33 = vld [vmem:[%s1802_s0 + $0x150] sm:$0xff] }
   0x9   :  { %v99_v30 = vpack.c.bf16 %v56_v26, %v55_v25  ;;  %v58_v34 = vld [vmem:[%s1802_s0 + $0x158] sm:$0xff]  ;;  %v27_v35 = vld [vmem:[%s1802_s0 + $0x60] sm:$0xff]  ;;  %v28_v36 = vld [vmem:[%s1802_s0 + $0x68] sm:$0xff]  ;;  %v84_v39 = vpack.c.bf16 %v26_v32, %v25_v31 }
   0xa   :  { %v59_v37 = vld [vmem:[%s1802_s0 + $0x160] sm:$0xff]  ;;  %v60_v38 = vld [vmem:[%s1802_s0 + $0x168] sm:$0xff]  ;;  %v100_v40 = vpack.c.bf16 %v58_v34, %v57_v33  ;;  %v85_v41 = vpack.c.bf16 %v28_v36, %v27_v35  ;;  %v29_v43 = vld [vmem:[%s1802_s0 + $0x70] sm:$0xff] }
   0xb   :  { %v101_v42 = vpack.c.bf16 %v60_v38, %v59_v37  ;;  %v30_v44 = vld [vmem:[%s1802_s0 + $0x78] sm:$0xff]  ;;  %v61_v45 = vld [vmem:[%s1802_s0 + $0x170] sm:$0xff]  ;;  %v31_v47 = vld [vmem:[%s1802_s0 + $0x80] sm:$0xff] }
   0xc   :  { %v62_v46 = vld [vmem:[%s1802_s0 + $0x178] sm:$0xff]  ;;  %v32_v48 = vld [vmem:[%s1802_s0 + $0x88] sm:$0xff]  ;;  %v63_v49 = vld [vmem:[%s1802_s0 + $0x180] sm:$0xff]  ;;  %v86_v51 = vpack.c.bf16 %v30_v44, %v29_v43 }
   0xd   :  { %v64_v50 = vld [vmem:[%s1802_s0 + $0x188] sm:$0xff]  ;;  %v102_v52 = vpack.c.bf16 %v62_v46, %v61_v45  ;;  %v87_v53 = vpack.c.bf16 %v32_v48, %v31_v47  ;;  %v33_v55 = vld [vmem:[%s1802_s0 + $0x90] sm:$0xff]  ;;  %v34_v56 = vld [vmem:[%s1802_s0 + $0x98] sm:$0xff] }
   0xe   :  { %1167 = vmatmul.mubr.msk.bf16.gmra.mrb[4].mxu0 %vm126_vm0, %v82_v27  ;;  %v103_v54 = vpack.c.bf16 %v64_v50, %v63_v49  ;;  %v65_v57 = vld [vmem:[%s1802_s0 + $0x190] sm:$0xff]  ;;  %v66_v58 = vld [vmem:[%s1802_s0 + $0x198] sm:$0xff]  ;;  %v35_v59 = vld [vmem:[%s1802_s0 + $0xa0] sm:$0xff]  ;;  %v88_v63 = vpack.c.bf16 %v34_v56, %v33_v55 }
   0xf   :  { %1199 = vmatmul.mubr.msk.bf16.gmra.mrb[4].mxu1 %vm126_vm0, %v98_v28  ;;  %1170 = vmatprep.mubr.msk.bf16.mxu0 %vm126_vm0, %v83_v29  ;;  %v36_v60 = vld [vmem:[%s1802_s0 + $0xa8] sm:$0xff]  ;;  %v67_v61 = vld [vmem:[%s1802_s0 + $0x1a0] sm:$0xff]  ;;  %v104_v0 = vpack.c.bf16 %v66_v58, %v65_v57  ;;  %v37_v3 = vld [vmem:[%s1802_s0 + $0xb0] sm:$0xff] }
  0x10   :  { %1202 = vmatprep.mubr.msk.bf16.mxu1 %vm126_vm0, %v99_v30  ;;  %v68_v62 = vld [vmem:[%s1802_s0 + $0x1a8] sm:$0xff]  ;;  %v89_v1 = vpack.c.bf16 %v36_v60, %v35_v59  ;;  %v38_v4 = vld [vmem:[%s1802_s0 + $0xb8] sm:$0xff]  ;;  %v69_v5 = vld [vmem:[%s1802_s0 + $0x1b0] sm:$0xff] }
  0x11   :  { %v105_v2 = vpack.c.bf16 %v68_v62, %v67_v61  ;;  %v70_v6 = vld [vmem:[%s1802_s0 + $0x1b8] sm:$0xff]  ;;  %v39_v7 = vld [vmem:[%s1802_s0 + $0xc0] sm:$0xff]  ;;  %v40_v8 = vld [vmem:[%s1802_s0 + $0xc8] sm:$0xff]  ;;  %v90_v11 = vpack.c.bf16 %v38_v4, %v37_v3 }
  0x12   :  { %v71_v9 = vld [vmem:[%s1802_s0 + $0x1c0] sm:$0xff]  ;;  %v72_v10 = vld [vmem:[%s1802_s0 + $0x1c8] sm:$0xff]  ;;  %v106_v12 = vpack.c.bf16 %v70_v6, %v69_v5  ;;  %v91_v13 = vpack.c.bf16 %v40_v8, %v39_v7  ;;  %v41_v15 = vld [vmem:[%s1802_s0 + $0xd0] sm:$0xff] }
  0x13   :  { %v107_v14 = vpack.c.bf16 %v72_v10, %v71_v9  ;;  %v42_v16 = vld [vmem:[%s1802_s0 + $0xd8] sm:$0xff]  ;;  %v73_v17 = vld [vmem:[%s1802_s0 + $0x1d0] sm:$0xff]  ;;  %v43_v19 = vld [vmem:[%s1802_s0 + $0xe0] sm:$0xff] }
  0x14   :  { %v74_v18 = vld [vmem:[%s1802_s0 + $0x1d8] sm:$0xff]  ;;  %v44_v20 = vld [vmem:[%s1802_s0 + $0xe8] sm:$0xff]  ;;  %v75_v21 = vld [vmem:[%s1802_s0 + $0x1e0] sm:$0xff]  ;;  %v92_v23 = vpack.c.bf16 %v42_v16, %v41_v15 }
  0x15   :  { %v76_v22 = vld [vmem:[%s1802_s0 + $0x1e8] sm:$0xff]  ;;  %v108_v24 = vpack.c.bf16 %v74_v18, %v73_v17  ;;  %v93_v25 = vpack.c.bf16 %v44_v20, %v43_v19  ;;  %v45_v27 = vld [vmem:[%s1802_s0 + $0xf0] sm:$0xff]  ;;  %v46_v28 = vld [vmem:[%s1802_s0 + $0xf8] sm:$0xff] }
  0x16   :  { %1171 = vmatmul.mubr.msk.bf16.gmra.mrb[8].mxu0 %vm126_vm0, %v84_v39  ;;  %v109_v26 = vpack.c.bf16 %v76_v22, %v75_v21  ;;  %v77_v29 = vld [vmem:[%s1802_s0 + $0x1f0] sm:$0xff]  ;;  %v78_v30 = vld [vmem:[%s1802_s0 + $0x1f8] sm:$0xff]  ;;  %v94_v31 = vpack.c.bf16 %v46_v28, %v45_v27  ;;  %v1479_v33 = vld [vmem:[%s1803_s2] ss:$0 sm:$0xff] }
  0x17   :  { %1203 = vmatmul.mubr.msk.bf16.gmra.mrb[8].mxu1 %vm126_vm0, %v100_v40  ;;  %1174 = vmatprep.mubr.msk.bf16.mxu0 %vm126_vm0, %v85_v41  ;;  %v110_v32 = vpack.c.bf16 %v78_v30, %v77_v29 }
  0x18   :  { %1206 = vmatprep.mubr.msk.bf16.mxu1 %vm126_vm0, %v101_v42 }
  0x1e   :  { %1175 = vmatmul.mubr.msk.bf16.gmra.mrb[12].mxu0 %vm126_vm0, %v86_v51 }
  0x1f   :  { %1207 = vmatmul.mubr.msk.bf16.gmra.mrb[12].mxu1 %vm126_vm0, %v102_v52  ;;  %1178 = vmatprep.mubr.msk.bf16.mxu0 %vm126_vm0, %v87_v53 }
  0x20   :  { %1210 = vmatprep.mubr.msk.bf16.mxu1 %vm126_vm0, %v103_v54 }
  0x26   :  { %1179 = vmatmul.mubr.msk.bf16.gmra.mrb[16].mxu0 %vm126_vm0, %v88_v63 }
  0x27   :  { %1211 = vmatmul.mubr.msk.bf16.gmra.mrb[16].mxu1 %vm126_vm0, %v104_v0  ;;  %1182 = vmatprep.mubr.msk.bf16.mxu0 %vm126_vm0, %v89_v1 }
  0x28   :  { %1214 = vmatprep.mubr.msk.bf16.mxu1 %vm126_vm0, %v105_v2 }
  0x2e   :  { %1183 = vmatmul.mubr.msk.bf16.gmra.mrb[20].mxu0 %vm126_vm0, %v90_v11 }
  0x2f   :  { %1215 = vmatmul.mubr.msk.bf16.gmra.mrb[20].mxu1 %vm126_vm0, %v106_v12  ;;  %1186 = vmatprep.mubr.msk.bf16.mxu0 %vm126_vm0, %v91_v13 }
  0x30   :  { %1218 = vmatprep.mubr.msk.bf16.mxu1 %vm126_vm0, %v107_v14 }
  0x36   :  { %1187 = vmatmul.mubr.msk.bf16.gmra.mrb[24].mxu0 %vm126_vm0, %v92_v23 }
  0x37   :  { %1219 = vmatmul.mubr.msk.bf16.gmra.mrb[24].mxu1 %vm126_vm0, %v108_v24  ;;  %1190 = vmatprep.mubr.msk.bf16.mxu0 %vm126_vm0, %v93_v25 }
  0x38   :  { %1222 = vmatprep.mubr.msk.bf16.mxu1 %vm126_vm0, %v109_v26 }
  0x3e   :  { %1191 = vmatmul.mubr.msk.bf16.gmra.mrb[28].mxu0 %vm126_vm0, %v94_v31 }
  0x3f   :  { %1223 = vmatmul.mubr.msk.bf16.gmra.mrb[28].mxu1 %vm126_vm0, %v110_v32 }
  0xd9   :  { %v1164_v34 = vpop.f32.mrb[0].mxu0 }
  0xda   :  { %v1196_v35 = vpop.f32.mrb[0].mxu1  ;;  %v266_v36 = vadd.f32 %v1164_v34, %v1479_v33  ;;  %v257_v38 = vpop.f32.mrb[1].mxu0 }
  0xdb   :  { %v394_v37 = vadd.f32 %v1196_v35, %v1479_v33  ;;  %v385_v39 = vpop.f32.mrb[1].mxu1  ;;  %v258_v40 = vadd.f32 %v1479_v33, %v257_v38  ;;  %v1165_v42 = vpop.f32.mrb[2].mxu0 }
  0xdc   :  { %v386_v41 = vadd.f32 %v1479_v33, %v385_v39  ;;  %v1197_v43 = vpop.f32.mrb[2].mxu1  ;;  %v514_v44 = vmax.f32 %v266_v36, 0.0  ;;  %v269_v46 = vadd.f32 %v1165_v42, %v1479_v33  ;;  %v260_v48 = vpop.f32.mrb[3].mxu0 }
  0xdd   :  { %v546_v45 = vmax.f32 %v394_v37, 0.0  ;;  %v397_v47 = vadd.f32 %v1197_v43, %v1479_v33  ;;  %v388_v49 = vpop.f32.mrb[3].mxu1  ;;  %v512_v50 = vmax.f32 %v258_v40, 0.0  ;;  %v261_v52 = vadd.f32 %v1479_v33, %v260_v48 }
  0xde   :  { %v544_v51 = vmax.f32 %v386_v41, 0.0  ;;  %v389_v53 = vadd.f32 %v1479_v33, %v388_v49  ;;  %v578_v54 = vmin.f32 %v514_v44, 6.0  ;;  %v515_v56 = vmax.f32 %v269_v46, 0.0 }
  0xdf   :  { %v610_v55 = vmin.f32 %v546_v45, 6.0  ;;  %v547_v57 = vmax.f32 %v397_v47, 0.0  ;;  %v576_v58 = vmin.f32 %v512_v50, 6.0  ;;  %v513_v60 = vmax.f32 %v261_v52, 0.0 }
  0xe0   :  { %v608_v59 = vmin.f32 %v544_v51, 6.0  ;;  %v545_v61 = vmax.f32 %v389_v53, 0.0  ;;  %v1065_v62 = vpack.c.bf16 %v578_v54, %v578_v54  ;;  %v579_v0 = vmin.f32 %v515_v56, 6.0 }
  0xe1   :  { %v1097_v63 = vpack.c.bf16 %v610_v55, %v610_v55  ;;  %v611_v1 = vmin.f32 %v547_v57, 6.0  ;;  %v1063_v2 = vpack.c.bf16 %v576_v58, %v576_v58  ;;  %v577_v4 = vmin.f32 %v513_v60, 6.0  ;;  %v1168_v6 = vpop.f32.mrb[4].mxu0 }
  0xe2   :  { %v1095_v3 = vpack.c.bf16 %v608_v59, %v608_v59  ;;  %v609_v5 = vmin.f32 %v545_v61, 6.0  ;;  %v1200_v7 = vpop.f32.mrb[4].mxu1  ;;  %899 = vst.msk [vmem:[%s1804_s3 + $0x8] sm:$0xf] %vm896_vm1, %v1065_v62  ;;  %v1066_v8 = vpack.c.bf16 %v579_v0, %v579_v0  ;;  %v282_v10 = vadd.f32 %v1168_v6, %v1479_v33  ;;  %v273_v12 = vpop.f32.mrb[5].mxu0 }
  0xe3   :  { %931 = vst.msk [vmem:[%s1804_s3 + $0x88] sm:$0xf] %vm896_vm1, %v1097_v63  ;;  %v1098_v9 = vpack.c.bf16 %v611_v1, %v611_v1  ;;  %v410_v11 = vadd.f32 %v1200_v7, %v1479_v33  ;;  %v401_v13 = vpop.f32.mrb[5].mxu1  ;;  %897 = vst.msk [vmem:[%s1804_s3] sm:$0xf] %vm896_vm1, %v1063_v2  ;;  %v1064_v14 = vpack.c.bf16 %v577_v4, %v577_v4  ;;  %v1169_v18 = vpop.f32.mrb[6].mxu0 }
  0xe4   :  { %929 = vst.msk [vmem:[%s1804_s3 + $0x80] sm:$0xf] %vm896_vm1, %v1095_v3  ;;  %v1096_v15 = vpack.c.bf16 %v609_v5, %v609_v5  ;;  %v274_v16 = vadd.f32 %v1479_v33, %v273_v12  ;;  %v402_v17 = vadd.f32 %v1479_v33, %v401_v13  ;;  %v1201_v19 = vpop.f32.mrb[6].mxu1  ;;  %900 = vst.msk [vmem:[%s1804_s3 + $0xc] sm:$0xf] %vm896_vm1, %v1066_v8  ;;  %v518_v20 = vmax.f32 %v282_v10, 0.0 }
  0xe5   :  { %932 = vst.msk [vmem:[%s1804_s3 + $0x8c] sm:$0xf] %vm896_vm1, %v1098_v9  ;;  %v550_v21 = vmax.f32 %v410_v11, 0.0  ;;  %v285_v22 = vadd.f32 %v1169_v18, %v1479_v33  ;;  %v413_v23 = vadd.f32 %v1201_v19, %v1479_v33  ;;  %v276_v24 = vpop.f32.mrb[7].mxu0  ;;  %v404_v25 = vpop.f32.mrb[7].mxu1 }
  0xe6   :  { %898 = vst.msk [vmem:[%s1804_s3 + $0x4] sm:$0xf] %vm896_vm1, %v1064_v14  ;;  %930 = vst.msk [vmem:[%s1804_s3 + $0x84] sm:$0xf] %vm896_vm1, %v1096_v15  ;;  %v516_v26 = vmax.f32 %v274_v16, 0.0  ;;  %v548_v27 = vmax.f32 %v402_v17, 0.0  ;;  %v277_v28 = vadd.f32 %v1479_v33, %v276_v24  ;;  %v405_v29 = vadd.f32 %v1479_v33, %v404_v25 }
  0xe7   :  { %v582_v30 = vmin.f32 %v518_v20, 6.0  ;;  %v614_v31 = vmin.f32 %v550_v21, 6.0  ;;  %v519_v32 = vmax.f32 %v285_v22, 0.0  ;;  %v551_v34 = vmax.f32 %v413_v23, 0.0 }
  0xe8   :  { %v580_v35 = vmin.f32 %v516_v26, 6.0  ;;  %v612_v36 = vmin.f32 %v548_v27, 6.0  ;;  %v517_v37 = vmax.f32 %v277_v28, 0.0  ;;  %v549_v38 = vmax.f32 %v405_v29, 0.0 }
  0xe9   :  { %v1069_v39 = vpack.c.bf16 %v582_v30, %v582_v30  ;;  %v1101_v40 = vpack.c.bf16 %v614_v31, %v614_v31  ;;  %v583_v41 = vmin.f32 %v519_v32, 6.0  ;;  %v615_v42 = vmin.f32 %v551_v34, 6.0  ;;  %v1172_v47 = vpop.f32.mrb[8].mxu0 }
  0xea   :  { %v1067_v43 = vpack.c.bf16 %v580_v35, %v580_v35  ;;  %v1099_v44 = vpack.c.bf16 %v612_v36, %v612_v36  ;;  %v581_v45 = vmin.f32 %v517_v37, 6.0  ;;  %v613_v46 = vmin.f32 %v549_v38, 6.0  ;;  %v1204_v48 = vpop.f32.mrb[8].mxu1  ;;  %v289_v53 = vpop.f32.mrb[9].mxu0 }
  0xeb   :  { %903 = vst.msk [vmem:[%s1804_s3 + $0x18] sm:$0xf] %vm896_vm1, %v1069_v39  ;;  %935 = vst.msk [vmem:[%s1804_s3 + $0x98] sm:$0xf] %vm896_vm1, %v1101_v40  ;;  %v1070_v49 = vpack.c.bf16 %v583_v41, %v583_v41  ;;  %v1102_v50 = vpack.c.bf16 %v615_v42, %v615_v42  ;;  %v298_v51 = vadd.f32 %v1172_v47, %v1479_v33  ;;  %v417_v54 = vpop.f32.mrb[9].mxu1  ;;  %v1173_v59 = vpop.f32.mrb[10].mxu0 }
  0xec   :  { %v426_v52 = vadd.f32 %v1204_v48, %v1479_v33  ;;  %901 = vst.msk [vmem:[%s1804_s3 + $0x10] sm:$0xf] %vm896_vm1, %v1067_v43  ;;  %933 = vst.msk [vmem:[%s1804_s3 + $0x90] sm:$0xf] %vm896_vm1, %v1099_v44  ;;  %v1068_v55 = vpack.c.bf16 %v581_v45, %v581_v45  ;;  %v1100_v56 = vpack.c.bf16 %v613_v46, %v613_v46  ;;  %v1205_v60 = vpop.f32.mrb[10].mxu1  ;;  %v292_v1 = vpop.f32.mrb[11].mxu0 }
  0xed   :  { %v290_v57 = vadd.f32 %v1479_v33, %v289_v53  ;;  %v418_v58 = vadd.f32 %v1479_v33, %v417_v54  ;;  %904 = vst.msk [vmem:[%s1804_s3 + $0x1c] sm:$0xf] %vm896_vm1, %v1070_v49  ;;  %936 = vst.msk [vmem:[%s1804_s3 + $0x9c] sm:$0xf] %vm896_vm1, %v1102_v50  ;;  %v522_v61 = vmax.f32 %v298_v51, 0.0  ;;  %v301_v63 = vadd.f32 %v1173_v59, %v1479_v33  ;;  %v420_v2 = vpop.f32.mrb[11].mxu1 }
  0xee   :  { %v554_v62 = vmax.f32 %v426_v52, 0.0  ;;  %v429_v0 = vadd.f32 %v1205_v60, %v1479_v33  ;;  %902 = vst.msk [vmem:[%s1804_s3 + $0x14] sm:$0xf] %vm896_vm1, %v1068_v55  ;;  %934 = vst.msk [vmem:[%s1804_s3 + $0x94] sm:$0xf] %vm896_vm1, %v1100_v56  ;;  %v293_v5 = vadd.f32 %v1479_v33, %v292_v1  ;;  %v421_v6 = vadd.f32 %v1479_v33, %v420_v2 }
  0xef   :  { %v520_v3 = vmax.f32 %v290_v57, 0.0  ;;  %v552_v4 = vmax.f32 %v418_v58, 0.0  ;;  %v586_v7 = vmin.f32 %v522_v61, 6.0  ;;  %v523_v9 = vmax.f32 %v301_v63, 0.0 }
  0xf0   :  { %v618_v8 = vmin.f32 %v554_v62, 6.0  ;;  %v555_v10 = vmax.f32 %v429_v0, 0.0  ;;  %v521_v13 = vmax.f32 %v293_v5, 0.0  ;;  %v553_v14 = vmax.f32 %v421_v6, 0.0 }
  0xf1   :  { %v584_v11 = vmin.f32 %v520_v3, 6.0  ;;  %v616_v12 = vmin.f32 %v552_v4, 6.0  ;;  %v1073_v15 = vpack.c.bf16 %v586_v7, %v586_v7  ;;  %v587_v17 = vmin.f32 %v523_v9, 6.0  ;;  %v1176_v23 = vpop.f32.mrb[12].mxu0 }
  0xf2   :  { %v1105_v16 = vpack.c.bf16 %v618_v8, %v618_v8  ;;  %v619_v18 = vmin.f32 %v555_v10, 6.0  ;;  %v585_v21 = vmin.f32 %v521_v13, 6.0  ;;  %v617_v22 = vmin.f32 %v553_v14, 6.0  ;;  %v1208_v24 = vpop.f32.mrb[12].mxu1  ;;  %v305_v29 = vpop.f32.mrb[13].mxu0 }
  0xf3   :  { %v1071_v19 = vpack.c.bf16 %v584_v11, %v584_v11  ;;  %v1103_v20 = vpack.c.bf16 %v616_v12, %v616_v12  ;;  %907 = vst.msk [vmem:[%s1804_s3 + $0x28] sm:$0xf] %vm896_vm1, %v1073_v15  ;;  %v1074_v25 = vpack.c.bf16 %v587_v17, %v587_v17  ;;  %v314_v27 = vadd.f32 %v1176_v23, %v1479_v33  ;;  %v433_v30 = vpop.f32.mrb[13].mxu1  ;;  %v1177_v36 = vpop.f32.mrb[14].mxu0 }
  0xf4   :  { %939 = vst.msk [vmem:[%s1804_s3 + $0xa8] sm:$0xf] %vm896_vm1, %v1105_v16  ;;  %v1106_v26 = vpack.c.bf16 %v619_v18, %v619_v18  ;;  %v442_v28 = vadd.f32 %v1208_v24, %v1479_v33  ;;  %v1072_v31 = vpack.c.bf16 %v585_v21, %v585_v21  ;;  %v1104_v32 = vpack.c.bf16 %v617_v22, %v617_v22  ;;  %v1209_v37 = vpop.f32.mrb[14].mxu1  ;;  %v308_v42 = vpop.f32.mrb[15].mxu0 }
  0xf5   :  { %905 = vst.msk [vmem:[%s1804_s3 + $0x20] sm:$0xf] %vm896_vm1, %v1071_v19  ;;  %937 = vst.msk [vmem:[%s1804_s3 + $0xa0] sm:$0xf] %vm896_vm1, %v1103_v20  ;;  %v306_v34 = vadd.f32 %v1479_v33, %v305_v29  ;;  %v434_v35 = vadd.f32 %v1479_v33, %v433_v30  ;;  %v526_v38 = vmax.f32 %v314_v27, 0.0  ;;  %v317_v40 = vadd.f32 %v1177_v36, %v1479_v33  ;;  %v436_v43 = vpop.f32.mrb[15].mxu1 }
  0xf6   :  { %908 = vst.msk [vmem:[%s1804_s3 + $0x2c] sm:$0xf] %vm896_vm1, %v1074_v25  ;;  %940 = vst.msk [vmem:[%s1804_s3 + $0xac] sm:$0xf] %vm896_vm1, %v1106_v26  ;;  %v558_v39 = vmax.f32 %v442_v28, 0.0  ;;  %v445_v41 = vadd.f32 %v1209_v37, %v1479_v33  ;;  %v309_v46 = vadd.f32 %v1479_v33, %v308_v42  ;;  %v437_v47 = vadd.f32 %v1479_v33, %v436_v43 }
  0xf7   :  { %906 = vst.msk [vmem:[%s1804_s3 + $0x24] sm:$0xf] %vm896_vm1, %v1072_v31  ;;  %938 = vst.msk [vmem:[%s1804_s3 + $0xa4] sm:$0xf] %vm896_vm1, %v1104_v32  ;;  %v524_v44 = vmax.f32 %v306_v34, 0.0  ;;  %v556_v45 = vmax.f32 %v434_v35, 0.0 }
  0xf8   :  { %v590_v48 = vmin.f32 %v526_v38, 6.0  ;;  %v622_v49 = vmin.f32 %v558_v39, 6.0  ;;  %v527_v50 = vmax.f32 %v317_v40, 0.0  ;;  %v559_v51 = vmax.f32 %v445_v41, 0.0 }
  0xf9   :  { %v588_v52 = vmin.f32 %v524_v44, 6.0  ;;  %v620_v53 = vmin.f32 %v556_v45, 6.0  ;;  %v525_v54 = vmax.f32 %v309_v46, 0.0  ;;  %v557_v55 = vmax.f32 %v437_v47, 0.0  ;;  %v1180_v0 = vpop.f32.mrb[16].mxu0 }
  0xfa   :  { %v1077_v56 = vpack.c.bf16 %v590_v48, %v590_v48  ;;  %v1109_v57 = vpack.c.bf16 %v622_v49, %v622_v49  ;;  %v591_v58 = vmin.f32 %v527_v50, 6.0  ;;  %v623_v59 = vmin.f32 %v559_v51, 6.0  ;;  %v1212_v1 = vpop.f32.mrb[16].mxu1  ;;  %v321_v6 = vpop.f32.mrb[17].mxu0 }
  0xfb   :  { %v1075_v60 = vpack.c.bf16 %v588_v52, %v588_v52  ;;  %v1107_v61 = vpack.c.bf16 %v620_v53, %v620_v53  ;;  %v589_v62 = vmin.f32 %v525_v54, 6.0  ;;  %v621_v63 = vmin.f32 %v557_v55, 6.0  ;;  %v449_v7 = vpop.f32.mrb[17].mxu1  ;;  %v1181_v12 = vpop.f32.mrb[18].mxu0 }
  0xfc   :  { %911 = vst.msk [vmem:[%s1804_s3 + $0x38] sm:$0xf] %vm896_vm1, %v1077_v56  ;;  %943 = vst.msk [vmem:[%s1804_s3 + $0xb8] sm:$0xf] %vm896_vm1, %v1109_v57  ;;  %v1078_v2 = vpack.c.bf16 %v591_v58, %v591_v58  ;;  %v1110_v3 = vpack.c.bf16 %v623_v59, %v623_v59  ;;  %v330_v4 = vadd.f32 %v1180_v0, %v1479_v33  ;;  %v1213_v13 = vpop.f32.mrb[18].mxu1  ;;  %v324_v18 = vpop.f32.mrb[19].mxu0 }
  0xfd   :  { %v458_v5 = vadd.f32 %v1212_v1, %v1479_v33  ;;  %909 = vst.msk [vmem:[%s1804_s3 + $0x30] sm:$0xf] %vm896_vm1, %v1075_v60  ;;  %941 = vst.msk [vmem:[%s1804_s3 + $0xb0] sm:$0xf] %vm896_vm1, %v1107_v61  ;;  %v1076_v8 = vpack.c.bf16 %v589_v62, %v589_v62  ;;  %v1108_v9 = vpack.c.bf16 %v621_v63, %v621_v63  ;;  %v452_v19 = vpop.f32.mrb[19].mxu1 }
  0xfe   :  { %v322_v10 = vadd.f32 %v1479_v33, %v321_v6  ;;  %v450_v11 = vadd.f32 %v1479_v33, %v449_v7  ;;  %912 = vst.msk [vmem:[%s1804_s3 + $0x3c] sm:$0xf] %vm896_vm1, %v1078_v2  ;;  %944 = vst.msk [vmem:[%s1804_s3 + $0xbc] sm:$0xf] %vm896_vm1, %v1110_v3  ;;  %v530_v14 = vmax.f32 %v330_v4, 0.0  ;;  %v333_v16 = vadd.f32 %v1181_v12, %v1479_v33 }
  0xff   :  { %v562_v15 = vmax.f32 %v458_v5, 0.0  ;;  %v461_v17 = vadd.f32 %v1213_v13, %v1479_v33  ;;  %910 = vst.msk [vmem:[%s1804_s3 + $0x34] sm:$0xf] %vm896_vm1, %v1076_v8  ;;  %942 = vst.msk [vmem:[%s1804_s3 + $0xb4] sm:$0xf] %vm896_vm1, %v1108_v9  ;;  %v325_v22 = vadd.f32 %v1479_v33, %v324_v18  ;;  %v453_v23 = vadd.f32 %v1479_v33, %v452_v19 }
 0x100   :  { %v528_v20 = vmax.f32 %v322_v10, 0.0  ;;  %v560_v21 = vmax.f32 %v450_v11, 0.0  ;;  %v594_v24 = vmin.f32 %v530_v14, 6.0  ;;  %v531_v26 = vmax.f32 %v333_v16, 0.0 }
 0x101   :  { %v626_v25 = vmin.f32 %v562_v15, 6.0  ;;  %v563_v27 = vmax.f32 %v461_v17, 0.0  ;;  %v529_v30 = vmax.f32 %v325_v22, 0.0  ;;  %v561_v31 = vmax.f32 %v453_v23, 0.0  ;;  %v1184_v41 = vpop.f32.mrb[20].mxu0 }
 0x102   :  { %v592_v28 = vmin.f32 %v528_v20, 6.0  ;;  %v624_v29 = vmin.f32 %v560_v21, 6.0  ;;  %v1081_v32 = vpack.c.bf16 %v594_v24, %v594_v24  ;;  %v595_v35 = vmin.f32 %v531_v26, 6.0  ;;  %v1216_v42 = vpop.f32.mrb[20].mxu1  ;;  %v337_v47 = vpop.f32.mrb[21].mxu0 }
 0x103   :  { %v1113_v34 = vpack.c.bf16 %v626_v25, %v626_v25  ;;  %v627_v36 = vmin.f32 %v563_v27, 6.0  ;;  %v593_v39 = vmin.f32 %v529_v30, 6.0  ;;  %v625_v40 = vmin.f32 %v561_v31, 6.0  ;;  %v465_v48 = vpop.f32.mrb[21].mxu1  ;;  %v1185_v53 = vpop.f32.mrb[22].mxu0 }
 0x104   :  { %v1079_v37 = vpack.c.bf16 %v592_v28, %v592_v28  ;;  %v1111_v38 = vpack.c.bf16 %v624_v29, %v624_v29  ;;  %915 = vst.msk [vmem:[%s1804_s3 + $0x48] sm:$0xf] %vm896_vm1, %v1081_v32  ;;  %v1082_v43 = vpack.c.bf16 %v595_v35, %v595_v35  ;;  %v346_v45 = vadd.f32 %v1184_v41, %v1479_v33  ;;  %v1217_v54 = vpop.f32.mrb[22].mxu1  ;;  %v340_v59 = vpop.f32.mrb[23].mxu0 }
 0x105   :  { %947 = vst.msk [vmem:[%s1804_s3 + $0xc8] sm:$0xf] %vm896_vm1, %v1113_v34  ;;  %v1114_v44 = vpack.c.bf16 %v627_v36, %v627_v36  ;;  %v474_v46 = vadd.f32 %v1216_v42, %v1479_v33  ;;  %v1080_v49 = vpack.c.bf16 %v593_v39, %v593_v39  ;;  %v1112_v50 = vpack.c.bf16 %v625_v40, %v625_v40  ;;  %v468_v60 = vpop.f32.mrb[23].mxu1 }
 0x106   :  { %913 = vst.msk [vmem:[%s1804_s3 + $0x40] sm:$0xf] %vm896_vm1, %v1079_v37  ;;  %945 = vst.msk [vmem:[%s1804_s3 + $0xc0] sm:$0xf] %vm896_vm1, %v1111_v38  ;;  %v338_v51 = vadd.f32 %v1479_v33, %v337_v47  ;;  %v466_v52 = vadd.f32 %v1479_v33, %v465_v48  ;;  %v534_v55 = vmax.f32 %v346_v45, 0.0  ;;  %v349_v57 = vadd.f32 %v1185_v53, %v1479_v33 }
 0x107   :  { %916 = vst.msk [vmem:[%s1804_s3 + $0x4c] sm:$0xf] %vm896_vm1, %v1082_v43  ;;  %948 = vst.msk [vmem:[%s1804_s3 + $0xcc] sm:$0xf] %vm896_vm1, %v1114_v44  ;;  %v566_v56 = vmax.f32 %v474_v46, 0.0  ;;  %v477_v58 = vadd.f32 %v1217_v54, %v1479_v33  ;;  %v341_v63 = vadd.f32 %v1479_v33, %v340_v59  ;;  %v469_v0 = vadd.f32 %v1479_v33, %v468_v60 }
 0x108   :  { %914 = vst.msk [vmem:[%s1804_s3 + $0x44] sm:$0xf] %vm896_vm1, %v1080_v49  ;;  %946 = vst.msk [vmem:[%s1804_s3 + $0xc4] sm:$0xf] %vm896_vm1, %v1112_v50  ;;  %v532_v61 = vmax.f32 %v338_v51, 0.0  ;;  %v564_v62 = vmax.f32 %v466_v52, 0.0 }
 0x109   :  { %v598_v1 = vmin.f32 %v534_v55, 6.0  ;;  %v630_v2 = vmin.f32 %v566_v56, 6.0  ;;  %v535_v3 = vmax.f32 %v349_v57, 0.0  ;;  %v567_v4 = vmax.f32 %v477_v58, 0.0  ;;  %v1188_v17 = vpop.f32.mrb[24].mxu0 }
 0x10a   :  { %v596_v5 = vmin.f32 %v532_v61, 6.0  ;;  %v628_v6 = vmin.f32 %v564_v62, 6.0  ;;  %v533_v7 = vmax.f32 %v341_v63, 0.0  ;;  %v565_v8 = vmax.f32 %v469_v0, 0.0  ;;  %v1220_v18 = vpop.f32.mrb[24].mxu1  ;;  %v353_v23 = vpop.f32.mrb[25].mxu0 }
 0x10b   :  { %v1085_v9 = vpack.c.bf16 %v598_v1, %v598_v1  ;;  %v1117_v10 = vpack.c.bf16 %v630_v2, %v630_v2  ;;  %v599_v11 = vmin.f32 %v535_v3, 6.0  ;;  %v631_v12 = vmin.f32 %v567_v4, 6.0  ;;  %v481_v24 = vpop.f32.mrb[25].mxu1  ;;  %v1189_v29 = vpop.f32.mrb[26].mxu0 }
 0x10c   :  { %v1083_v13 = vpack.c.bf16 %v596_v5, %v596_v5  ;;  %v1115_v14 = vpack.c.bf16 %v628_v6, %v628_v6  ;;  %v597_v15 = vmin.f32 %v533_v7, 6.0  ;;  %v629_v16 = vmin.f32 %v565_v8, 6.0  ;;  %v1221_v30 = vpop.f32.mrb[26].mxu1  ;;  %v356_v36 = vpop.f32.mrb[27].mxu0 }
 0x10d   :  { %919 = vst.msk [vmem:[%s1804_s3 + $0x58] sm:$0xf] %vm896_vm1, %v1085_v9  ;;  %951 = vst.msk [vmem:[%s1804_s3 + $0xd8] sm:$0xf] %vm896_vm1, %v1117_v10  ;;  %v1086_v19 = vpack.c.bf16 %v599_v11, %v599_v11  ;;  %v1118_v20 = vpack.c.bf16 %v631_v12, %v631_v12  ;;  %v362_v21 = vadd.f32 %v1188_v17, %v1479_v33  ;;  %v484_v37 = vpop.f32.mrb[27].mxu1 }
 0x10e   :  { %v490_v22 = vadd.f32 %v1220_v18, %v1479_v33  ;;  %917 = vst.msk [vmem:[%s1804_s3 + $0x50] sm:$0xf] %vm896_vm1, %v1083_v13  ;;  %949 = vst.msk [vmem:[%s1804_s3 + $0xd0] sm:$0xf] %vm896_vm1, %v1115_v14  ;;  %v1084_v25 = vpack.c.bf16 %v597_v15, %v597_v15  ;;  %v1116_v26 = vpack.c.bf16 %v629_v16, %v629_v16 }
 0x10f   :  { %v354_v27 = vadd.f32 %v1479_v33, %v353_v23  ;;  %v482_v28 = vadd.f32 %v1479_v33, %v481_v24  ;;  %920 = vst.msk [vmem:[%s1804_s3 + $0x5c] sm:$0xf] %vm896_vm1, %v1086_v19  ;;  %952 = vst.msk [vmem:[%s1804_s3 + $0xdc] sm:$0xf] %vm896_vm1, %v1118_v20  ;;  %v538_v31 = vmax.f32 %v362_v21, 0.0  ;;  %v365_v34 = vadd.f32 %v1189_v29, %v1479_v33 }
 0x110   :  { %v570_v32 = vmax.f32 %v490_v22, 0.0  ;;  %v493_v35 = vadd.f32 %v1221_v30, %v1479_v33  ;;  %918 = vst.msk [vmem:[%s1804_s3 + $0x54] sm:$0xf] %vm896_vm1, %v1084_v25  ;;  %950 = vst.msk [vmem:[%s1804_s3 + $0xd4] sm:$0xf] %vm896_vm1, %v1116_v26  ;;  %v357_v40 = vadd.f32 %v1479_v33, %v356_v36  ;;  %v485_v41 = vadd.f32 %v1479_v33, %v484_v37 }
 0x111   :  { %v536_v38 = vmax.f32 %v354_v27, 0.0  ;;  %v568_v39 = vmax.f32 %v482_v28, 0.0  ;;  %v602_v42 = vmin.f32 %v538_v31, 6.0  ;;  %v539_v44 = vmax.f32 %v365_v34, 0.0  ;;  %v1192_v58 = vpop.f32.mrb[28].mxu0 }
 0x112   :  { %v634_v43 = vmin.f32 %v570_v32, 6.0  ;;  %v571_v45 = vmax.f32 %v493_v35, 0.0  ;;  %v537_v48 = vmax.f32 %v357_v40, 0.0  ;;  %v569_v49 = vmax.f32 %v485_v41, 0.0  ;;  %v1224_v59 = vpop.f32.mrb[28].mxu1  ;;  %v369_v0 = vpop.f32.mrb[29].mxu0 }
 0x113   :  { %v600_v46 = vmin.f32 %v536_v38, 6.0  ;;  %v632_v47 = vmin.f32 %v568_v39, 6.0  ;;  %v1089_v50 = vpack.c.bf16 %v602_v42, %v602_v42  ;;  %v603_v52 = vmin.f32 %v539_v44, 6.0  ;;  %v497_v1 = vpop.f32.mrb[29].mxu1  ;;  %v1193_v6 = vpop.f32.mrb[30].mxu0 }
 0x114   :  { %v1121_v51 = vpack.c.bf16 %v634_v43, %v634_v43  ;;  %v635_v53 = vmin.f32 %v571_v45, 6.0  ;;  %v601_v56 = vmin.f32 %v537_v48, 6.0  ;;  %v633_v57 = vmin.f32 %v569_v49, 6.0  ;;  %v1225_v7 = vpop.f32.mrb[30].mxu1  ;;  %v372_v12 = vpop.f32.mrb[31].mxu0 }
 0x115   :  { %v1087_v54 = vpack.c.bf16 %v600_v46, %v600_v46  ;;  %v1119_v55 = vpack.c.bf16 %v632_v47, %v632_v47  ;;  %923 = vst.msk [vmem:[%s1804_s3 + $0x68] sm:$0xf] %vm896_vm1, %v1089_v50  ;;  %v1090_v60 = vpack.c.bf16 %v603_v52, %v603_v52  ;;  %v378_v62 = vadd.f32 %v1192_v58, %v1479_v33  ;;  %v500_v13 = vpop.f32.mrb[31].mxu1 }
 0x116   :  { %955 = vst.msk [vmem:[%s1804_s3 + $0xe8] sm:$0xf] %vm896_vm1, %v1121_v51  ;;  %v1122_v61 = vpack.c.bf16 %v635_v53, %v635_v53  ;;  %v506_v63 = vadd.f32 %v1224_v59, %v1479_v33  ;;  %v1088_v2 = vpack.c.bf16 %v601_v56, %v601_v56  ;;  %v1120_v3 = vpack.c.bf16 %v633_v57, %v633_v57 }
 0x117   :  { %921 = vst.msk [vmem:[%s1804_s3 + $0x60] sm:$0xf] %vm896_vm1, %v1087_v54  ;;  %953 = vst.msk [vmem:[%s1804_s3 + $0xe0] sm:$0xf] %vm896_vm1, %v1119_v55  ;;  %v370_v4 = vadd.f32 %v1479_v33, %v369_v0  ;;  %v498_v5 = vadd.f32 %v1479_v33, %v497_v1  ;;  %v542_v8 = vmax.f32 %v378_v62, 0.0  ;;  %v381_v10 = vadd.f32 %v1193_v6, %v1479_v33 }
 0x118   :  { %924 = vst.msk [vmem:[%s1804_s3 + $0x6c] sm:$0xf] %vm896_vm1, %v1090_v60  ;;  %956 = vst.msk [vmem:[%s1804_s3 + $0xec] sm:$0xf] %vm896_vm1, %v1122_v61  ;;  %v574_v9 = vmax.f32 %v506_v63, 0.0  ;;  %v509_v11 = vadd.f32 %v1225_v7, %v1479_v33  ;;  %v373_v16 = vadd.f32 %v1479_v33, %v372_v12  ;;  %v501_v17 = vadd.f32 %v1479_v33, %v500_v13 }
 0x119   :  { %922 = vst.msk [vmem:[%s1804_s3 + $0x64] sm:$0xf] %vm896_vm1, %v1088_v2  ;;  %954 = vst.msk [vmem:[%s1804_s3 + $0xe4] sm:$0xf] %vm896_vm1, %v1120_v3  ;;  %v540_v14 = vmax.f32 %v370_v4, 0.0  ;;  %v572_v15 = vmax.f32 %v498_v5, 0.0 }
 0x11a   :  { %v606_v18 = vmin.f32 %v542_v8, 6.0  ;;  %v638_v19 = vmin.f32 %v574_v9, 6.0  ;;  %v543_v20 = vmax.f32 %v381_v10, 0.0  ;;  %v575_v21 = vmax.f32 %v509_v11, 0.0 }
 0x11b   :  { %v604_v22 = vmin.f32 %v540_v14, 6.0  ;;  %v636_v23 = vmin.f32 %v572_v15, 6.0  ;;  %v541_v24 = vmax.f32 %v373_v16, 0.0  ;;  %v573_v25 = vmax.f32 %v501_v17, 0.0 }
 0x11c   :  { %v1093_v26 = vpack.c.bf16 %v606_v18, %v606_v18  ;;  %v1125_v27 = vpack.c.bf16 %v638_v19, %v638_v19  ;;  %v607_v28 = vmin.f32 %v543_v20, 6.0  ;;  %v639_v29 = vmin.f32 %v575_v21, 6.0 }
 0x11d   :  { %v1091_v30 = vpack.c.bf16 %v604_v22, %v604_v22  ;;  %v1123_v31 = vpack.c.bf16 %v636_v23, %v636_v23  ;;  %v605_v32 = vmin.f32 %v541_v24, 6.0  ;;  %v637_v34 = vmin.f32 %v573_v25, 6.0 }
 0x11e   :  { %927 = vst.msk [vmem:[%s1804_s3 + $0x78] sm:$0xf] %vm896_vm1, %v1093_v26  ;;  %959 = vst.msk [vmem:[%s1804_s3 + $0xf8] sm:$0xf] %vm896_vm1, %v1125_v27  ;;  %v1094_v33 = vpack.c.bf16 %v607_v28, %v607_v28  ;;  %v1126_v35 = vpack.c.bf16 %v639_v29, %v639_v29 }
 0x11f   :  { %925 = vst.msk [vmem:[%s1804_s3 + $0x70] sm:$0xf] %vm896_vm1, %v1091_v30  ;;  %957 = vst.msk [vmem:[%s1804_s3 + $0xf0] sm:$0xf] %vm896_vm1, %v1123_v31  ;;  %v1092_v36 = vpack.c.bf16 %v605_v32, %v605_v32  ;;  %v1124_v37 = vpack.c.bf16 %v637_v34, %v637_v34 }
 0x120   :  { %928 = vst.msk [vmem:[%s1804_s3 + $0x7c] sm:$0xf] %vm896_vm1, %v1094_v33  ;;  %960 = vst.msk [vmem:[%s1804_s3 + $0xfc] sm:$0xf] %vm896_vm1, %v1126_v35 }
 0x121   :  { %926 = vst.msk [vmem:[%s1804_s3 + $0x74] sm:$0xf] %vm896_vm1, %v1092_v36  ;;  %958 = vst.msk [vmem:[%s1804_s3 + $0xf4] sm:$0xf] %vm896_vm1, %v1124_v37 }

</bundles_post_ra>
